<compile_context>
chip_gen: v6e
topology: v6e:2x2x1
jax: 0.10.0
libtpu: 0.0.40
codegen_flags: <defaults>
</compile_context>

<pallas_src>
import functools

import jax
import jax.numpy as jnp
from jax import lax
from jax.experimental import pallas as pl
from jax.experimental.pallas import tpu as pltpu


# ---------------------------------------------------------------------------
# Tiling / VMEM helpers
# ---------------------------------------------------------------------------
def _largest_divisor_at_most(n, cap):
    cap = max(1, min(n, cap))
    for d in range(cap, 0, -1):
        if n % d == 0:
            return d
    return 1


def _antisym_tile(L):
    """Square, 128-aligned score tile for the antisymmetric path (or None)."""
    for nb in (2, 3, 4):               # keep the static tile count small (<= 10 tiles)
        if L % nb == 0 and (L // nb) % 128 == 0:
            return L // nb
    return None


def _stream_tile(L):
    """Row-slab height for the streaming (scratch-free) path."""
    for cand in range(min(L, 256), 7, -1):
        if L % cand == 0 and cand % 8 == 0:
            return cand
    return L


def _vmem_bytes(shape, itemsize):
    """VMEM footprint of an array (last two dims padded to the (8, 128) tile)."""
    shape = tuple(shape)
    if len(shape) < 2:
        shape = (1,) * (2 - len(shape)) + shape
    lead = 1
    for d in shape[:-2]:
        lead *= d
    sub = -(-shape[-2] // 8) * 8
    lane = -(-shape[-1] // 128) * 128
    return lead * sub * lane * itemsize


def _tpu_budget():
    """(physical VMEM bytes, TensorCores per chip) with conservative fallbacks."""
    vmem_cap = 64 * 1024 * 1024        # v7x per-TC VMEM (smallest across generations)
    try:
        info = pltpu.get_tpu_info()
        vmem_cap = int(getattr(info, "vmem_capacity_bytes", vmem_cap) or vmem_cap)
    except Exception:
        pass
    cores = 1
    try:
        cores = int(getattr(jax.devices()[0], "num_cores", 1) or 1)
    except Exception:
        pass
    return vmem_cap, cores


def _per_batch_vmem(L, E, Dv, val_isz, out_isz, ts, use_antisym, return_atten):
    """Estimated resident VMEM bytes per folded batch."""
    f32 = 4
    b = 0
    b += 2 * _vmem_bytes((L, E), f32)          # P   (double-buffered input)
    b += 2 * _vmem_bytes((E, L), f32)          # P^T
    b += 2 * _vmem_bytes((L, Dv), val_isz)     # value
    b += 2 * _vmem_bytes((L, Dv), out_isz)     # context output
    if return_atten:
        b += 2 * _vmem_bytes((L, L), out_isz)  # atten output (double-buffered)
    if use_antisym:
        b += _vmem_bytes((L, L), f32)          # f32 score scratch
    # live per-slab temporaries (score slab, exp, atten slab, tanh temp)
    b += 4 * _vmem_bytes((ts, L), f32) + 2 * _vmem_bytes((ts, ts), f32)
    return b


# ---------------------------------------------------------------------------
# Kernel
# ---------------------------------------------------------------------------
def minus_atten_kernel(p_ref, pT_ref, v_ref, vm_ref, *refs,
                       ts, use_antisym, return_atten):
    """One grid step = TB folded batches.

    p_ref  : (TB, L, E)  f32   P[b, i, e] = (Wm q[b, i])[e]   (rows on sublanes)
    pT_ref : (TB, E, L)  f32   same data, L on the 128-wide lane axis
    v_ref  : (TB, L, Dv)
    vm_ref : (1, E)      f32
    outputs: ctx_ref (TB, L, Dv) [, att_ref (TB, L, L)]
    scratch: [sjt_ref (TB, L, L) f32]   (antisymmetric path only)
    """
    if use_antisym and return_atten:
        ctx_ref, att_ref, sjt_ref = refs
    elif use_antisym:
        (ctx_ref, sjt_ref), att_ref = refs, None
    elif return_atten:
        (ctx_ref, att_ref), sjt_ref = refs, None
    else:
        (ctx_ref,), att_ref, sjt_ref = refs, None, None

    TB, L, E = p_ref.shape

    # Hoisted, loop-invariant loads.
    vmv = vm_ref[...].astype(jnp.float32)      # (1, E)
    v = v_ref[...]                             # (TB, L, Dv)

    def score_tile(i0, ti, j0, tj):
        # s[b, i, j] = sum_e vm[e] * tanh(P[b, j0+j, e] - P[b, i0+i, e])
        # Lane-dense: j lives on the lane axis, so the EUP tanh (binding unit)
        # and the VPU sub/mul run at full lane utilization.  The tiny per-e
        # (1, tj)/(ti, 1) loads are ~1/ts of the tanh work and hide under it.
        acc = jnp.zeros((TB, ti, tj), jnp.float32)
        for e in range(E):                                        # static unroll
            row = pT_ref[:, pl.ds(e, 1), pl.ds(j0, tj)]           # (TB, 1, tj)
            col = p_ref[:, pl.ds(i0, ti), pl.ds(e, 1)]            # (TB, ti, 1)
            acc = acc + vmv[:, e:e + 1] * jnp.tanh(row - col)
        return acc

    def softmax_context(i0, ti, s):
        # Streamed per-row-slab softmax (dim=2 of the (B, L, L) scores) and the
        # context matmul: no (TB, L, L) temporaries, lane-dense (ti, L) stores.
        m = jnp.max(s, axis=-1, keepdims=True)
        ex = jnp.exp(s - m)
        den = jnp.sum(ex, axis=-1, keepdims=True)
        inv = pl.reciprocal(den, approx=True)                     # EUP slot
        inv = inv * (2.0 - den * inv)                             # one Newton step
        a = ex * inv                                              # (TB, ti, L) f32
        if return_atten:
            att_ref[:, pl.ds(i0, ti), :] = a.astype(att_ref.dtype)
        ctx = jnp.einsum("bij,bjd->bid", a.astype(v.dtype), v,
                         preferred_element_type=jnp.float32)
        ctx_ref[:, pl.ds(i0, ti), :] = ctx.astype(ctx_ref.dtype)

    nb = L // ts
    if use_antisym:
        # sjt[b, j, i] = -sjt[b, i, j] (tanh is odd, vm a fixed linear map), so
        # only the upper block-triangle is computed; mirrors are negated 2-D XLU
        # transposes (XLU idle during the tanh phase) -> ~2x less EUP work.
        for ib in range(nb):
            i0 = ib * ts
            for jb in range(ib, nb):
                j0 = jb * ts
                tile = score_tile(i0, ts, j0, ts)                  # (TB, ts, ts)
                sjt_ref[:, pl.ds(i0, ts), pl.ds(j0, ts)] = tile
                if jb > ib:
                    for b in range(TB):                            # 2-D transposes
                        sjt_ref[pl.ds(b, 1), pl.ds(j0, ts), pl.ds(i0, ts)] = (
                            -tile[b].T)[None]
            # Every tile feeding row-block ib is now written (j >= ib above,
            # j < ib as mirrors from earlier ib iterations) -> stream its
            # softmax + context while later tiles are still to come.
            softmax_context(i0, ts, sjt_ref[:, pl.ds(i0, ts), :])
    else:
        # Streaming path: each (TB, ts, L) row slab is computed, softmaxed and
        # contracted with V immediately -> no score scratch at all.
        if nb <= 8:
            for ib in range(nb):
                i0 = ib * ts
                softmax_context(i0, ts, score_tile(i0, ts, 0, L))
        else:
            def body(ib, carry):
                i0 = pl.multiple_of(ib * ts, ts)
                softmax_context(i0, ts, score_tile(i0, ts, 0, L))
                return carry
            lax.fori_loop(0, nb, body, 0)


# ---------------------------------------------------------------------------
# Wrapper
# ---------------------------------------------------------------------------
def minus_atten(query, key, value, wm_weight, vm_weight, *, atten_mask=None,
                batch_block=None, return_atten=True):
    """query/key: (B, L, 2E), value: (B, L, Dv), wm_weight: (E, 2E), vm_weight: (1, E).

    `key` is accepted for API parity with the PyTorch module but is unused (the
    reference forward builds the pairwise interaction from `query` alone);
    dropout is the identity at inference.
    """
    if atten_mask is not None:
        # TODO(synk): masked_fill_(atten_mask, -inf) branch not implemented.
        raise NotImplementedError("minus_atten: atten_mask is not supported")
    del key

    B, L, D2 = query.shape
    Dv = value.shape[-1]
    E = wm_weight.shape[0]
    assert wm_weight.shape == (E, D2) and vm_weight.shape == (1, E)

    # Wm is linear (no bias): Wm(q_j - q_i) = (Wm q_j) - (Wm q_i).  Project once
    # (tiny O(B*L*2E*E) matmul, done by XLA) and hand the kernel BOTH layouts the
    # lane-dense score phase needs.  Same HBM bytes as shipping `query` itself.
    p = jnp.einsum("bld,ed->ble", query, wm_weight,
                   precision=jax.lax.Precision.HIGHEST,
                   preferred_element_type=jnp.float32)       # (B, L, E) f32
    pT = jnp.swapaxes(p, 1, 2)                               # (B, E, L) f32 (lane-dense)
    vm = vm_weight.astype(jnp.float32)                       # (1, E)

    # ---- generation-aware tiling / VMEM budgeting --------------------------
    vmem_cap, cores = _tpu_budget()
    budget = max(12 << 20, int(0.40 * vmem_cap))   # ~25 MiB on v7x, ~51 MiB on v5e/v6e

    val_isz = value.dtype.itemsize
    out_isz = query.dtype.itemsize

    ts = _antisym_tile(L)
    use_antisym = ts is not None
    if use_antisym and _per_batch_vmem(L, E, Dv, val_isz, out_isz, ts, True,
                                       return_atten) > budget:
        use_antisym = False            # even TB=1 would not fit -> stream instead
    if not use_antisym:
        ts = _stream_tile(L)

    pbb = _per_batch_vmem(L, E, Dv, val_isz, out_isz, ts, use_antisym, return_atten)

    if batch_block is not None:
        TB = batch_block
        assert B % TB == 0, "batch_block must divide B"
    else:
        cap = max(1, budget // max(pbb, 1))
        # Keep >= 2 grid steps only on multi-TensorCore chips; single-TC chips
        # (v5e / v6e) fold as many batches per step as VMEM allows.
        if cores >= 2 and B >= 2:
            cap = min(cap, max(1, B // 2))
        TB = _largest_divisor_at_most(B, cap)

    vmem_limit = int(min(max(32 << 20, TB * pbb + (4 << 20)), int(0.95 * vmem_cap)))

    kernel = functools.partial(minus_atten_kernel, ts=ts,
                               use_antisym=use_antisym, return_atten=return_atten)

    out_shape = [jax.ShapeDtypeStruct((B, L, Dv), query.dtype)]
    out_specs = [pl.BlockSpec((TB, L, Dv), lambda b: (b, 0, 0))]
    if return_atten:
        out_shape.append(jax.ShapeDtypeStruct((B, L, L), query.dtype))
        out_specs.append(pl.BlockSpec((TB, L, L), lambda b: (b, 0, 0)))

    scratch_shapes = []
    if use_antisym:
        scratch_shapes.append(pltpu.VMEM((TB, L, L), jnp.float32))

    grid_spec = pltpu.PrefetchScalarGridSpec(
        num_scalar_prefetch=0,
        grid=(B // TB,),
        in_specs=[
            pl.BlockSpec((TB, L, E), lambda b: (b, 0, 0)),    # P
            pl.BlockSpec((TB, E, L), lambda b: (b, 0, 0)),    # P^T (lane-dense rows)
            pl.BlockSpec((TB, L, Dv), lambda b: (b, 0, 0)),   # value
            pl.BlockSpec((1, E), lambda b: (0, 0)),           # vm (shared)
        ],
        out_specs=tuple(out_specs),
        scratch_shapes=scratch_shapes,
    )

    out = pl.pallas_call(
        kernel,
        out_shape=tuple(out_shape),
        grid_spec=grid_spec,
        compiler_params=pltpu.CompilerParams(
            dimension_semantics=("parallel",),
            vmem_limit_bytes=vmem_limit),
    )(p, pT, value, vm)

    if return_atten:
        return out[0], out[1]
    return out[0], None


# ---------------------------------------------------------------------------
# Pure-JAX reference (literal translation of the PyTorch forward)
# ---------------------------------------------------------------------------
def ref_minus_atten(query, value, wm_weight, vm_weight):
    hi = jax.lax.Precision.HIGHEST
    q4 = query[:, None, :, :]                                  # (B, 1, L, 2E)
    k4 = query[:, :, None, :]                                  # (B, L, 1, 2E)
    d = q4 - k4                                                # d[b,i,j] = q[b,j]-q[b,i]
    h = jnp.tanh(jnp.einsum("bijd,ed->bije", d, wm_weight, precision=hi))
    sjt = jnp.einsum("bije,oe->bijo", h, vm_weight, precision=hi)[..., 0]
    atten = jax.nn.softmax(sjt, axis=2)
    context = jnp.einsum("bij,bjd->bid", atten, value, precision=hi)
    return context, atten


if __name__ == "__main__":
    def run_case(B, L, E, Dv, return_atten=True, atol=1e-3, rtol=1e-3):
        D2 = 2 * E
        k1, k2, k3, k4, k5 = jax.random.split(jax.random.PRNGKey(0), 5)
        query = jax.random.normal(k1, (B, L, D2), jnp.float32)
        key_in = jax.random.normal(k2, (B, L, D2), jnp.float32)   # unused by the module
        value = jax.random.normal(k3, (B, L, Dv), jnp.float32)
        wm_w = jax.random.normal(k4, (E, D2), jnp.float32) * 0.1  # nn.Linear(2E, E).weight
        vm_w = jax.random.normal(k5, (1, E), jnp.float32) * 0.1   # nn.Linear(E, 1).weight

        ctx, att = minus_atten(query, key_in, value, wm_w, vm_w,
                               return_atten=return_atten)
        jax.block_until_ready(ctx)

        ctx_ref, att_ref = ref_minus_atten(query, value, wm_w, vm_w)
        assert jnp.allclose(ctx, ctx_ref, atol=atol, rtol=rtol), f"context mismatch (L={L})"
        if return_atten:
            assert jnp.allclose(att, att_ref, atol=atol, rtol=rtol), f"atten mismatch (L={L})"
        else:
            assert att is None

    # Small shape: streaming path (single row slab, no score scratch).
    run_case(B=2, L=8, E=16, Dv=32, return_atten=True, atol=1e-4, rtol=1e-4)
    # Larger shape: antisymmetric tiled path (128x128 tiles, mirrored via negated
    # XLU transposes) + streamed per-row-block softmax / context.
    run_case(B=2, L=256, E=16, Dv=64, return_atten=True, atol=2e-3, rtol=2e-3)
    # Context-only path (drops the (B, L, L) atten HBM writeback).
    run_case(B=2, L=256, E=16, Dv=64, return_atten=False, atol=2e-3, rtol=2e-3)

    print("KERNEL_OK")
</pallas_src>

<mosaic_0001>
module attributes {stable_mosaic.version = 11 : i64} {
  func.func @minus_atten_kernel(%arg0: i32, %arg1: memref<2x8x16xf32, #tpu.memory_space<vmem>>, %arg2: memref<2x16x8xf32, #tpu.memory_space<vmem>>, %arg3: memref<2x8x32xf32, #tpu.memory_space<vmem>>, %arg4: memref<1x16xf32, #tpu.memory_space<vmem>>, %arg5: memref<2x8x32xf32, #tpu.memory_space<vmem>>, %arg6: memref<2x8x8xf32, #tpu.memory_space<vmem>>) attributes {dimension_semantics = [#tpu.dimension_semantics<parallel>], iteration_bounds = array<i64: 1>, scalar_prefetch = 0 : i64, scratch_operands = 0 : i64, tpu.core_type = #tpu.core_type<tc>, window_params = [{transform_indices = @transform_0, window_bounds = array<i64: 2, 8, 16>}, {transform_indices = @transform_1, window_bounds = array<i64: 2, 16, 8>}, {transform_indices = @transform_2, window_bounds = array<i64: 2, 8, 32>}, {pipeline_mode = #tpu.pipeline_mode<synchronous>, transform_indices = @transform_3, window_bounds = array<i64: 1, 16>}, {transform_indices = @transform_4, window_bounds = array<i64: 2, 8, 32>}, {transform_indices = @transform_5, window_bounds = array<i64: 2, 8, 8>}]} {
    %c0 = arith.constant 0 : index
    %c0_0 = arith.constant 0 : index
    %0 = vector.load %arg4[%c0, %c0_0] : memref<1x16xf32, #tpu.memory_space<vmem>>, vector<1x16xf32>
    %c0_1 = arith.constant 0 : index
    %c0_2 = arith.constant 0 : index
    %c0_3 = arith.constant 0 : index
    %1 = vector.load %arg3[%c0_1, %c0_2, %c0_3] : memref<2x8x32xf32, #tpu.memory_space<vmem>>, vector<2x8x32xf32>
    %cst = arith.constant 0.000000e+00 : f32
    %2 = vector.broadcast %cst : f32 to vector<2x8x8xf32>
    %c0_4 = arith.constant 0 : index
    %c0_5 = arith.constant 0 : index
    %c0_6 = arith.constant 0 : index
    %3 = vector.load %arg2[%c0_4, %c0_5, %c0_6] : memref<2x16x8xf32, #tpu.memory_space<vmem>>, vector<2x1x8xf32>
    %c0_7 = arith.constant 0 : index
    %c0_8 = arith.constant 0 : index
    %c0_9 = arith.constant 0 : index
    %4 = vector.load %arg1[%c0_7, %c0_8, %c0_9] : memref<2x8x16xf32, #tpu.memory_space<vmem>>, vector<2x8x1xf32>
    %5 = vector.extract_strided_slice %0 {offsets = [0, 0], sizes = [1, 1], strides = [1, 1]} : vector<1x16xf32> to vector<1x1xf32>
    %6 = vector.broadcast %3 : vector<2x1x8xf32> to vector<2x8x8xf32>
    %7 = vector.broadcast %4 : vector<2x8x1xf32> to vector<2x8x8xf32>
    %8 = arith.subf %6, %7 : vector<2x8x8xf32>
    %9 = math.tanh %8 : vector<2x8x8xf32>
    %10 = vector.shape_cast %5 : vector<1x1xf32> to vector<1x1x1xf32>
    %11 = vector.broadcast %10 : vector<1x1x1xf32> to vector<2x8x8xf32>
    %12 = arith.mulf %11, %9 : vector<2x8x8xf32>
    %13 = arith.addf %2, %12 : vector<2x8x8xf32>
    %c0_10 = arith.constant 0 : index
    %c1 = arith.constant 1 : index
    %c0_11 = arith.constant 0 : index
    %14 = vector.load %arg2[%c0_10, %c1, %c0_11] : memref<2x16x8xf32, #tpu.memory_space<vmem>>, vector<2x1x8xf32>
    %c0_12 = arith.constant 0 : index
    %c0_13 = arith.constant 0 : index
    %c1_14 = arith.constant 1 : index
    %15 = vector.load %arg1[%c0_12, %c0_13, %c1_14] : memref<2x8x16xf32, #tpu.memory_space<vmem>>, vector<2x8x1xf32>
    %16 = vector.extract_strided_slice %0 {offsets = [0, 1], sizes = [1, 1], strides = [1, 1]} : vector<1x16xf32> to vector<1x1xf32>
    %17 = vector.broadcast %14 : vector<2x1x8xf32> to vector<2x8x8xf32>
    %18 = vector.broadcast %15 : vector<2x8x1xf32> to vector<2x8x8xf32>
    %19 = arith.subf %17, %18 : vector<2x8x8xf32>
    %20 = math.tanh %19 : vector<2x8x8xf32>
    %21 = vector.shape_cast %16 : vector<1x1xf32> to vector<1x1x1xf32>
    %22 = vector.broadcast %21 : vector<1x1x1xf32> to vector<2x8x8xf32>
    %23 = arith.mulf %22, %20 : vector<2x8x8xf32>
    %24 = arith.addf %13, %23 : vector<2x8x8xf32>
    %c0_15 = arith.constant 0 : index
    %c2 = arith.constant 2 : index
    %c0_16 = arith.constant 0 : index
    %25 = vector.load %arg2[%c0_15, %c2, %c0_16] : memref<2x16x8xf32, #tpu.memory_space<vmem>>, vector<2x1x8xf32>
    %c0_17 = arith.constant 0 : index
    %c0_18 = arith.constant 0 : index
    %c2_19 = arith.constant 2 : index
    %26 = vector.load %arg1[%c0_17, %c0_18, %c2_19] : memref<2x8x16xf32, #tpu.memory_space<vmem>>, vector<2x8x1xf32>
    %27 = vector.extract_strided_slice %0 {offsets = [0, 2], sizes = [1, 1], strides = [1, 1]} : vector<1x16xf32> to vector<1x1xf32>
    %28 = vector.broadcast %25 : vector<2x1x8xf32> to vector<2x8x8xf32>
    %29 = vector.broadcast %26 : vector<2x8x1xf32> to vector<2x8x8xf32>
    %30 = arith.subf %28, %29 : vector<2x8x8xf32>
    %31 = math.tanh %30 : vector<2x8x8xf32>
    %32 = vector.shape_cast %27 : vector<1x1xf32> to vector<1x1x1xf32>
    %33 = vector.broadcast %32 : vector<1x1x1xf32> to vector<2x8x8xf32>
    %34 = arith.mulf %33, %31 : vector<2x8x8xf32>
    %35 = arith.addf %24, %34 : vector<2x8x8xf32>
    %c0_20 = arith.constant 0 : index
    %c3 = arith.constant 3 : index
    %c0_21 = arith.constant 0 : index
    %36 = vector.load %arg2[%c0_20, %c3, %c0_21] : memref<2x16x8xf32, #tpu.memory_space<vmem>>, vector<2x1x8xf32>
    %c0_22 = arith.constant 0 : index
    %c0_23 = arith.constant 0 : index
    %c3_24 = arith.constant 3 : index
    %37 = vector.load %arg1[%c0_22, %c0_23, %c3_24] : memref<2x8x16xf32, #tpu.memory_space<vmem>>, vector<2x8x1xf32>
    %38 = vector.extract_strided_slice %0 {offsets = [0, 3], sizes = [1, 1], strides = [1, 1]} : vector<1x16xf32> to vector<1x1xf32>
    %39 = vector.broadcast %36 : vector<2x1x8xf32> to vector<2x8x8xf32>
    %40 = vector.broadcast %37 : vector<2x8x1xf32> to vector<2x8x8xf32>
    %41 = arith.subf %39, %40 : vector<2x8x8xf32>
    %42 = math.tanh %41 : vector<2x8x8xf32>
    %43 = vector.shape_cast %38 : vector<1x1xf32> to vector<1x1x1xf32>
    %44 = vector.broadcast %43 : vector<1x1x1xf32> to vector<2x8x8xf32>
    %45 = arith.mulf %44, %42 : vector<2x8x8xf32>
    %46 = arith.addf %35, %45 : vector<2x8x8xf32>
    %c0_25 = arith.constant 0 : index
    %c4 = arith.constant 4 : index
    %c0_26 = arith.constant 0 : index
    %47 = vector.load %arg2[%c0_25, %c4, %c0_26] : memref<2x16x8xf32, #tpu.memory_space<vmem>>, vector<2x1x8xf32>
    %c0_27 = arith.constant 0 : index
    %c0_28 = arith.constant 0 : index
    %c4_29 = arith.constant 4 : index
    %48 = vector.load %arg1[%c0_27, %c0_28, %c4_29] : memref<2x8x16xf32, #tpu.memory_space<vmem>>, vector<2x8x1xf32>
    %49 = vector.extract_strided_slice %0 {offsets = [0, 4], sizes = [1, 1], strides = [1, 1]} : vector<1x16xf32> to vector<1x1xf32>
    %50 = vector.broadcast %47 : vector<2x1x8xf32> to vector<2x8x8xf32>
    %51 = vector.broadcast %48 : vector<2x8x1xf32> to vector<2x8x8xf32>
    %52 = arith.subf %50, %51 : vector<2x8x8xf32>
    %53 = math.tanh %52 : vector<2x8x8xf32>
    %54 = vector.shape_cast %49 : vector<1x1xf32> to vector<1x1x1xf32>
    %55 = vector.broadcast %54 : vector<1x1x1xf32> to vector<2x8x8xf32>
    %56 = arith.mulf %55, %53 : vector<2x8x8xf32>
    %57 = arith.addf %46, %56 : vector<2x8x8xf32>
    %c0_30 = arith.constant 0 : index
    %c5 = arith.constant 5 : index
    %c0_31 = arith.constant 0 : index
    %58 = vector.load %arg2[%c0_30, %c5, %c0_31] : memref<2x16x8xf32, #tpu.memory_space<vmem>>, vector<2x1x8xf32>
    %c0_32 = arith.constant 0 : index
    %c0_33 = arith.constant 0 : index
    %c5_34 = arith.constant 5 : index
    %59 = vector.load %arg1[%c0_32, %c0_33, %c5_34] : memref<2x8x16xf32, #tpu.memory_space<vmem>>, vector<2x8x1xf32>
    %60 = vector.extract_strided_slice %0 {offsets = [0, 5], sizes = [1, 1], strides = [1, 1]} : vector<1x16xf32> to vector<1x1xf32>
    %61 = vector.broadcast %58 : vector<2x1x8xf32> to vector<2x8x8xf32>
    %62 = vector.broadcast %59 : vector<2x8x1xf32> to vector<2x8x8xf32>
    %63 = arith.subf %61, %62 : vector<2x8x8xf32>
    %64 = math.tanh %63 : vector<2x8x8xf32>
    %65 = vector.shape_cast %60 : vector<1x1xf32> to vector<1x1x1xf32>
    %66 = vector.broadcast %65 : vector<1x1x1xf32> to vector<2x8x8xf32>
    %67 = arith.mulf %66, %64 : vector<2x8x8xf32>
    %68 = arith.addf %57, %67 : vector<2x8x8xf32>
    %c0_35 = arith.constant 0 : index
    %c6 = arith.constant 6 : index
    %c0_36 = arith.constant 0 : index
    %69 = vector.load %arg2[%c0_35, %c6, %c0_36] : memref<2x16x8xf32, #tpu.memory_space<vmem>>, vector<2x1x8xf32>
    %c0_37 = arith.constant 0 : index
    %c0_38 = arith.constant 0 : index
    %c6_39 = arith.constant 6 : index
    %70 = vector.load %arg1[%c0_37, %c0_38, %c6_39] : memref<2x8x16xf32, #tpu.memory_space<vmem>>, vector<2x8x1xf32>
    %71 = vector.extract_strided_slice %0 {offsets = [0, 6], sizes = [1, 1], strides = [1, 1]} : vector<1x16xf32> to vector<1x1xf32>
    %72 = vector.broadcast %69 : vector<2x1x8xf32> to vector<2x8x8xf32>
    %73 = vector.broadcast %70 : vector<2x8x1xf32> to vector<2x8x8xf32>
    %74 = arith.subf %72, %73 : vector<2x8x8xf32>
    %75 = math.tanh %74 : vector<2x8x8xf32>
    %76 = vector.shape_cast %71 : vector<1x1xf32> to vector<1x1x1xf32>
    %77 = vector.broadcast %76 : vector<1x1x1xf32> to vector<2x8x8xf32>
    %78 = arith.mulf %77, %75 : vector<2x8x8xf32>
    %79 = arith.addf %68, %78 : vector<2x8x8xf32>
    %c0_40 = arith.constant 0 : index
    %c7 = arith.constant 7 : index
    %c0_41 = arith.constant 0 : index
    %80 = vector.load %arg2[%c0_40, %c7, %c0_41] : memref<2x16x8xf32, #tpu.memory_space<vmem>>, vector<2x1x8xf32>
    %c0_42 = arith.constant 0 : index
    %c0_43 = arith.constant 0 : index
    %c7_44 = arith.constant 7 : index
    %81 = vector.load %arg1[%c0_42, %c0_43, %c7_44] : memref<2x8x16xf32, #tpu.memory_space<vmem>>, vector<2x8x1xf32>
    %82 = vector.extract_strided_slice %0 {offsets = [0, 7], sizes = [1, 1], strides = [1, 1]} : vector<1x16xf32> to vector<1x1xf32>
    %83 = vector.broadcast %80 : vector<2x1x8xf32> to vector<2x8x8xf32>
    %84 = vector.broadcast %81 : vector<2x8x1xf32> to vector<2x8x8xf32>
    %85 = arith.subf %83, %84 : vector<2x8x8xf32>
    %86 = math.tanh %85 : vector<2x8x8xf32>
    %87 = vector.shape_cast %82 : vector<1x1xf32> to vector<1x1x1xf32>
    %88 = vector.broadcast %87 : vector<1x1x1xf32> to vector<2x8x8xf32>
    %89 = arith.mulf %88, %86 : vector<2x8x8xf32>
    %90 = arith.addf %79, %89 : vector<2x8x8xf32>
    %c0_45 = arith.constant 0 : index
    %c8 = arith.constant 8 : index
    %c0_46 = arith.constant 0 : index
    %91 = vector.load %arg2[%c0_45, %c8, %c0_46] : memref<2x16x8xf32, #tpu.memory_space<vmem>>, vector<2x1x8xf32>
    %c0_47 = arith.constant 0 : index
    %c0_48 = arith.constant 0 : index
    %c8_49 = arith.constant 8 : index
    %92 = vector.load %arg1[%c0_47, %c0_48, %c8_49] : memref<2x8x16xf32, #tpu.memory_space<vmem>>, vector<2x8x1xf32>
    %93 = vector.extract_strided_slice %0 {offsets = [0, 8], sizes = [1, 1], strides = [1, 1]} : vector<1x16xf32> to vector<1x1xf32>
    %94 = vector.broadcast %91 : vector<2x1x8xf32> to vector<2x8x8xf32>
    %95 = vector.broadcast %92 : vector<2x8x1xf32> to vector<2x8x8xf32>
    %96 = arith.subf %94, %95 : vector<2x8x8xf32>
    %97 = math.tanh %96 : vector<2x8x8xf32>
    %98 = vector.shape_cast %93 : vector<1x1xf32> to vector<1x1x1xf32>
    %99 = vector.broadcast %98 : vector<1x1x1xf32> to vector<2x8x8xf32>
    %100 = arith.mulf %99, %97 : vector<2x8x8xf32>
    %101 = arith.addf %90, %100 : vector<2x8x8xf32>
    %c0_50 = arith.constant 0 : index
    %c9 = arith.constant 9 : index
    %c0_51 = arith.constant 0 : index
    %102 = vector.load %arg2[%c0_50, %c9, %c0_51] : memref<2x16x8xf32, #tpu.memory_space<vmem>>, vector<2x1x8xf32>
    %c0_52 = arith.constant 0 : index
    %c0_53 = arith.constant 0 : index
    %c9_54 = arith.constant 9 : index
    %103 = vector.load %arg1[%c0_52, %c0_53, %c9_54] : memref<2x8x16xf32, #tpu.memory_space<vmem>>, vector<2x8x1xf32>
    %104 = vector.extract_strided_slice %0 {offsets = [0, 9], sizes = [1, 1], strides = [1, 1]} : vector<1x16xf32> to vector<1x1xf32>
    %105 = vector.broadcast %102 : vector<2x1x8xf32> to vector<2x8x8xf32>
    %106 = vector.broadcast %103 : vector<2x8x1xf32> to vector<2x8x8xf32>
    %107 = arith.subf %105, %106 : vector<2x8x8xf32>
    %108 = math.tanh %107 : vector<2x8x8xf32>
    %109 = vector.shape_cast %104 : vector<1x1xf32> to vector<1x1x1xf32>
    %110 = vector.broadcast %109 : vector<1x1x1xf32> to vector<2x8x8xf32>
    %111 = arith.mulf %110, %108 : vector<2x8x8xf32>
    %112 = arith.addf %101, %111 : vector<2x8x8xf32>
    %c0_55 = arith.constant 0 : index
    %c10 = arith.constant 10 : index
    %c0_56 = arith.constant 0 : index
    %113 = vector.load %arg2[%c0_55, %c10, %c0_56] : memref<2x16x8xf32, #tpu.memory_space<vmem>>, vector<2x1x8xf32>
    %c0_57 = arith.constant 0 : index
    %c0_58 = arith.constant 0 : index
    %c10_59 = arith.constant 10 : index
    %114 = vector.load %arg1[%c0_57, %c0_58, %c10_59] : memref<2x8x16xf32, #tpu.memory_space<vmem>>, vector<2x8x1xf32>
    %115 = vector.extract_strided_slice %0 {offsets = [0, 10], sizes = [1, 1], strides = [1, 1]} : vector<1x16xf32> to vector<1x1xf32>
    %116 = vector.broadcast %113 : vector<2x1x8xf32> to vector<2x8x8xf32>
    %117 = vector.broadcast %114 : vector<2x8x1xf32> to vector<2x8x8xf32>
    %118 = arith.subf %116, %117 : vector<2x8x8xf32>
    %119 = math.tanh %118 : vector<2x8x8xf32>
    %120 = vector.shape_cast %115 : vector<1x1xf32> to vector<1x1x1xf32>
    %121 = vector.broadcast %120 : vector<1x1x1xf32> to vector<2x8x8xf32>
    %122 = arith.mulf %121, %119 : vector<2x8x8xf32>
    %123 = arith.addf %112, %122 : vector<2x8x8xf32>
    %c0_60 = arith.constant 0 : index
    %c11 = arith.constant 11 : index
    %c0_61 = arith.constant 0 : index
    %124 = vector.load %arg2[%c0_60, %c11, %c0_61] : memref<2x16x8xf32, #tpu.memory_space<vmem>>, vector<2x1x8xf32>
    %c0_62 = arith.constant 0 : index
    %c0_63 = arith.constant 0 : index
    %c11_64 = arith.constant 11 : index
    %125 = vector.load %arg1[%c0_62, %c0_63, %c11_64] : memref<2x8x16xf32, #tpu.memory_space<vmem>>, vector<2x8x1xf32>
    %126 = vector.extract_strided_slice %0 {offsets = [0, 11], sizes = [1, 1], strides = [1, 1]} : vector<1x16xf32> to vector<1x1xf32>
    %127 = vector.broadcast %124 : vector<2x1x8xf32> to vector<2x8x8xf32>
    %128 = vector.broadcast %125 : vector<2x8x1xf32> to vector<2x8x8xf32>
    %129 = arith.subf %127, %128 : vector<2x8x8xf32>
    %130 = math.tanh %129 : vector<2x8x8xf32>
    %131 = vector.shape_cast %126 : vector<1x1xf32> to vector<1x1x1xf32>
    %132 = vector.broadcast %131 : vector<1x1x1xf32> to vector<2x8x8xf32>
    %133 = arith.mulf %132, %130 : vector<2x8x8xf32>
    %134 = arith.addf %123, %133 : vector<2x8x8xf32>
    %c0_65 = arith.constant 0 : index
    %c12 = arith.constant 12 : index
    %c0_66 = arith.constant 0 : index
    %135 = vector.load %arg2[%c0_65, %c12, %c0_66] : memref<2x16x8xf32, #tpu.memory_space<vmem>>, vector<2x1x8xf32>
    %c0_67 = arith.constant 0 : index
    %c0_68 = arith.constant 0 : index
    %c12_69 = arith.constant 12 : index
    %136 = vector.load %arg1[%c0_67, %c0_68, %c12_69] : memref<2x8x16xf32, #tpu.memory_space<vmem>>, vector<2x8x1xf32>
    %137 = vector.extract_strided_slice %0 {offsets = [0, 12], sizes = [1, 1], strides = [1, 1]} : vector<1x16xf32> to vector<1x1xf32>
    %138 = vector.broadcast %135 : vector<2x1x8xf32> to vector<2x8x8xf32>
    %139 = vector.broadcast %136 : vector<2x8x1xf32> to vector<2x8x8xf32>
    %140 = arith.subf %138, %139 : vector<2x8x8xf32>
    %141 = math.tanh %140 : vector<2x8x8xf32>
    %142 = vector.shape_cast %137 : vector<1x1xf32> to vector<1x1x1xf32>
    %143 = vector.broadcast %142 : vector<1x1x1xf32> to vector<2x8x8xf32>
    %144 = arith.mulf %143, %141 : vector<2x8x8xf32>
    %145 = arith.addf %134, %144 : vector<2x8x8xf32>
    %c0_70 = arith.constant 0 : index
    %c13 = arith.constant 13 : index
    %c0_71 = arith.constant 0 : index
    %146 = vector.load %arg2[%c0_70, %c13, %c0_71] : memref<2x16x8xf32, #tpu.memory_space<vmem>>, vector<2x1x8xf32>
    %c0_72 = arith.constant 0 : index
    %c0_73 = arith.constant 0 : index
    %c13_74 = arith.constant 13 : index
    %147 = vector.load %arg1[%c0_72, %c0_73, %c13_74] : memref<2x8x16xf32, #tpu.memory_space<vmem>>, vector<2x8x1xf32>
    %148 = vector.extract_strided_slice %0 {offsets = [0, 13], sizes = [1, 1], strides = [1, 1]} : vector<1x16xf32> to vector<1x1xf32>
    %149 = vector.broadcast %146 : vector<2x1x8xf32> to vector<2x8x8xf32>
    %150 = vector.broadcast %147 : vector<2x8x1xf32> to vector<2x8x8xf32>
    %151 = arith.subf %149, %150 : vector<2x8x8xf32>
    %152 = math.tanh %151 : vector<2x8x8xf32>
    %153 = vector.shape_cast %148 : vector<1x1xf32> to vector<1x1x1xf32>
    %154 = vector.broadcast %153 : vector<1x1x1xf32> to vector<2x8x8xf32>
    %155 = arith.mulf %154, %152 : vector<2x8x8xf32>
    %156 = arith.addf %145, %155 : vector<2x8x8xf32>
    %c0_75 = arith.constant 0 : index
    %c14 = arith.constant 14 : index
    %c0_76 = arith.constant 0 : index
    %157 = vector.load %arg2[%c0_75, %c14, %c0_76] : memref<2x16x8xf32, #tpu.memory_space<vmem>>, vector<2x1x8xf32>
    %c0_77 = arith.constant 0 : index
    %c0_78 = arith.constant 0 : index
    %c14_79 = arith.constant 14 : index
    %158 = vector.load %arg1[%c0_77, %c0_78, %c14_79] : memref<2x8x16xf32, #tpu.memory_space<vmem>>, vector<2x8x1xf32>
    %159 = vector.extract_strided_slice %0 {offsets = [0, 14], sizes = [1, 1], strides = [1, 1]} : vector<1x16xf32> to vector<1x1xf32>
    %160 = vector.broadcast %157 : vector<2x1x8xf32> to vector<2x8x8xf32>
    %161 = vector.broadcast %158 : vector<2x8x1xf32> to vector<2x8x8xf32>
    %162 = arith.subf %160, %161 : vector<2x8x8xf32>
    %163 = math.tanh %162 : vector<2x8x8xf32>
    %164 = vector.shape_cast %159 : vector<1x1xf32> to vector<1x1x1xf32>
    %165 = vector.broadcast %164 : vector<1x1x1xf32> to vector<2x8x8xf32>
    %166 = arith.mulf %165, %163 : vector<2x8x8xf32>
    %167 = arith.addf %156, %166 : vector<2x8x8xf32>
    %c0_80 = arith.constant 0 : index
    %c15 = arith.constant 15 : index
    %c0_81 = arith.constant 0 : index
    %168 = vector.load %arg2[%c0_80, %c15, %c0_81] : memref<2x16x8xf32, #tpu.memory_space<vmem>>, vector<2x1x8xf32>
    %c0_82 = arith.constant 0 : index
    %c0_83 = arith.constant 0 : index
    %c15_84 = arith.constant 15 : index
    %169 = vector.load %arg1[%c0_82, %c0_83, %c15_84] : memref<2x8x16xf32, #tpu.memory_space<vmem>>, vector<2x8x1xf32>
    %170 = vector.extract_strided_slice %0 {offsets = [0, 15], sizes = [1, 1], strides = [1, 1]} : vector<1x16xf32> to vector<1x1xf32>
    %171 = vector.broadcast %168 : vector<2x1x8xf32> to vector<2x8x8xf32>
    %172 = vector.broadcast %169 : vector<2x8x1xf32> to vector<2x8x8xf32>
    %173 = arith.subf %171, %172 : vector<2x8x8xf32>
    %174 = math.tanh %173 : vector<2x8x8xf32>
    %175 = vector.shape_cast %170 : vector<1x1xf32> to vector<1x1x1xf32>
    %176 = vector.broadcast %175 : vector<1x1x1xf32> to vector<2x8x8xf32>
    %177 = arith.mulf %176, %174 : vector<2x8x8xf32>
    %178 = arith.addf %167, %177 : vector<2x8x8xf32>
    %cst_85 = arith.constant dense<0xFF800000> : vector<2x8xf32>
    %179 = vector.multi_reduction <maximumf>, %178, %cst_85 [2] : vector<2x8x8xf32> to vector<2x8xf32>
    %180 = vector.shape_cast %179 : vector<2x8xf32> to vector<2x8x1xf32>
    %181 = vector.broadcast %180 : vector<2x8x1xf32> to vector<2x8x8xf32>
    %182 = arith.subf %178, %181 : vector<2x8x8xf32>
    %183 = math.exp %182 : vector<2x8x8xf32>
    %cst_86 = arith.constant dense<0.000000e+00> : vector<2x8xf32>
    %184 = vector.multi_reduction <add>, %183, %cst_86 [2] : vector<2x8x8xf32> to vector<2x8xf32>
    %185 = vector.shape_cast %184 : vector<2x8xf32> to vector<2x8x1xf32>
    %186 = tpu.reciprocal %185 {approx = true} : vector<2x8x1xf32> -> vector<2x8x1xf32>
    %187 = arith.mulf %185, %186 : vector<2x8x1xf32>
    %cst_87 = arith.constant 2.000000e+00 : f32
    %188 = vector.broadcast %cst_87 : f32 to vector<2x8x1xf32>
    %189 = arith.subf %188, %187 : vector<2x8x1xf32>
    %190 = arith.mulf %186, %189 : vector<2x8x1xf32>
    %191 = vector.broadcast %190 : vector<2x8x1xf32> to vector<2x8x8xf32>
    %192 = arith.mulf %183, %191 : vector<2x8x8xf32>
    %c0_88 = arith.constant 0 : index
    %c0_89 = arith.constant 0 : index
    %c0_90 = arith.constant 0 : index
    %193 = vector.load %arg6[%c0_88, %c0_89, %c0_90] : memref<2x8x8xf32, #tpu.memory_space<vmem>>, vector<2x8x8xf32>
    tpu.vector_store %arg6[%c0_88, %c0_89, %c0_90], %192 {strides = array<i32>} : memref<2x8x8xf32, #tpu.memory_space<vmem>>, vector<2x8x8xf32>,
    "tpu.trace_start"() <{level = 10 : i32, message = "bij,bjd->bid"}> : () -> ()
    %cst_91 = arith.constant dense<0.000000e+00> : vector<2x8x32xf32>
    %194 = tpu.matmul %192, %1, %cst_91 {dimension_numbers = #tpu.dot_dimension_numbers<[2], [1], [1], [2], [0, 0, 0, 1, 1, 2], [0], [0]>} : vector<2x8x8xf32>, vector<2x8x32xf32>, vector<2x8x32xf32> -> vector<2x8x32xf32>
    "tpu.trace_stop"() : () -> ()
    %c0_92 = arith.constant 0 : index
    %c0_93 = arith.constant 0 : index
    %c0_94 = arith.constant 0 : index
    %195 = vector.load %arg5[%c0_92, %c0_93, %c0_94] : memref<2x8x32xf32, #tpu.memory_space<vmem>>, vector<2x8x32xf32>
    tpu.vector_store %arg5[%c0_92, %c0_93, %c0_94], %194 {strides = array<i32>} : memref<2x8x32xf32, #tpu.memory_space<vmem>>, vector<2x8x32xf32>,
    return
  }
  func.func @transform_0(%arg0: i32) -> (i32, i32, i32) {
    %c0_i32 = arith.constant 0 : i32
    %c0_i32_0 = arith.constant 0 : i32
    %c0_i32_1 = arith.constant 0 : i32
    return %arg0, %c0_i32, %c0_i32_0 : i32, i32, i32
  }
  func.func @transform_1(%arg0: i32) -> (i32, i32, i32) {
    %c0_i32 = arith.constant 0 : i32
    %c0_i32_0 = arith.constant 0 : i32
    %c0_i32_1 = arith.constant 0 : i32
    return %arg0, %c0_i32, %c0_i32_0 : i32, i32, i32
  }
  func.func @transform_2(%arg0: i32) -> (i32, i32, i32) {
    %c0_i32 = arith.constant 0 : i32
    %c0_i32_0 = arith.constant 0 : i32
    %c0_i32_1 = arith.constant 0 : i32
    return %arg0, %c0_i32, %c0_i32_0 : i32, i32, i32
  }
  func.func @transform_3(%arg0: i32) -> (i32, i32) {
    %c0_i32 = arith.constant 0 : i32
    %c0_i32_0 = arith.constant 0 : i32
    %c0_i32_1 = arith.constant 0 : i32
    return %c0_i32, %c0_i32_0 : i32, i32
  }
  func.func @transform_4(%arg0: i32) -> (i32, i32, i32) {
    %c0_i32 = arith.constant 0 : i32
    %c0_i32_0 = arith.constant 0 : i32
    %c0_i32_1 = arith.constant 0 : i32
    return %arg0, %c0_i32, %c0_i32_0 : i32, i32, i32
  }
  func.func @transform_5(%arg0: i32) -> (i32, i32, i32) {
    %c0_i32 = arith.constant 0 : i32
    %c0_i32_0 = arith.constant 0 : i32
    %c0_i32_1 = arith.constant 0 : i32
    return %arg0, %c0_i32, %c0_i32_0 : i32, i32, i32
  }
}

</mosaic_0001>

<bundles_post_ra>
// kernel: tpu_custom_call.1
= control target key start
LH: loop header
LB: loop body
LE: loop exit
PB: predicated region body
PF: predicated region fallthrough
CT: control target
= control target key end

     0   :  { %11 = vsyncpa [#allocation3], 0  ;;  %v946_v1 = vmov 1   ;;  %v947_v2 = vmov 0   ;;  %s1236_s0 = inlined_call_operand.vmem [shape: f32[2,8,16], index: 0, kind: input, shape index: {}]   ;;  %s1237_s1 = inlined_call_operand.vmem [shape: f32[2,16,8], index: 1, kind: input, shape index: {}]   ;;  %s1238_s2 = inlined_call_operand.vmem [shape: f32[2,8,32], index: 2, kind: input, shape index: {}]   ;;  %s1239_s3 = inlined_call_operand.vmem [shape: f32[1,16], index: 3, kind: input, shape index: {}]   ;;  %s1240_s4 = inlined_call_operand.hbm [shape: f32[2,8,32], index: 4, kind: output, shape index: {0}]   ;;  %s1241_s5 = inlined_call_operand.hbm [shape: f32[2,8,8], index: 5, kind: output, shape index: {1}]  }
   0x1   :  { %v1001_v0 = vld [vmem:[%s1236_s0] sm:$0xff]  ;;  %797 = vset.pattern.permute.xlu1 %v946_v1  ;;  %796 = vset.pattern.permute.xlu0 %v947_v2  ;;  %v1008_v3 = vld [vmem:[%s1236_s0 + $0x8] sm:$0xff] }
   0x2   :  { %74 = vperm.xlu1 %797, %v1001_v0   ;;  %38 = vperm.xlu0 %796, %v1001_v0  }
   0x3   :  { %12 = vsyncpa [#allocation5], 0  ;;  %v948_v4 = vmov 2   ;;  %v949_v5 = vmov 8   ;;  %v1017_v6 = vld [vmem:[%s1239_s3] ss:$0 sm:$0xff] }
   0x4   :  { %v950_v7 = vmov 3   ;;  %v951_v8 = vmov 4   ;;  %v952_v9 = vmov 5   ;;  %v953_v10 = vmov 6   ;;  %v728_v28 = vld [vmem:[%s1237_s1 + $0x1] ss:$0 sm:$0xff] }
   0x5   :  { %v954_v11 = vmov 7   ;;  %v955_v12 = vmov 9   ;;  %v956_v13 = vmov 10   ;;  %v957_v14 = vmov 11   ;;  %v725_v30 = vld [vmem:[%s1237_s1] ss:$0 sm:$0xff] }
   0x6   :  { %78 = vperm.xlu1 %797, %v1008_v3   ;;  %43 = vperm.xlu0 %796, %v1008_v3   ;;  %v958_v15 = vmov 14   ;;  %v959_v16 = vmov 15   ;;  %v960_v17 = vmov 12   ;;  %v961_v18 = vmov 13   ;;  %v729_v31 = vld [vmem:[%s1237_s1 + $0x11] ss:$0 sm:$0xff] }
   0x7   :  { %v726_v34 = vld [vmem:[%s1237_s1 + $0x10] ss:$0 sm:$0xff]  ;;  %v730_v36 = vld [vmem:[%s1237_s1 + $0x2] ss:$0 sm:$0xff]  ;;  %v731_v39 = vld [vmem:[%s1237_s1 + $0x12] ss:$0 sm:$0xff] }
   0x8   :  { %v732_v44 = vld [vmem:[%s1237_s1 + $0x3] ss:$0 sm:$0xff]  ;;  %v734_v45 = vld [vmem:[%s1237_s1 + $0x4] ss:$0 sm:$0xff]  ;;  %vm513_vm0 = vcmask 64512   ;;  %vm963_vm1 = vmmov 0  }
   0xa   :  { %798 = vset.pattern.permute.xlu1 %v948_v4  ;;  %804 = vset.pattern.permute.xlu0 %v949_v5 }
   0xb   :  { %108 = vperm.xlu1 %798, %v1008_v3   ;;  %284 = vperm.xlu0 %804, %v1001_v0  }
   0xf   :  { %799 = vset.pattern.permute.xlu1 %v950_v7  ;;  %807 = vset.pattern.permute.xlu0 %v946_v1 }
  0x10   :  { %134 = vperm.xlu1 %799, %v1001_v0   ;;  %86 = vperm.xlu0 %807, %v1017_v6  }
  0x14   :  { %800 = vset.pattern.permute.xlu1 %v951_v8  ;;  %808 = vset.pattern.permute.xlu0 %v948_v4 }
  0x15   :  { %164 = vperm.xlu1 %800, %v1001_v0   ;;  %104 = vperm.xlu0 %808, %v1001_v0  }
  0x19   :  { %168 = vperm.xlu1 %800, %v1008_v3   ;;  %116 = vperm.xlu0 %808, %v1017_v6  }
  0x1d   :  { %801 = vset.pattern.permute.xlu1 %v952_v9  ;;  %810 = vset.pattern.permute.xlu0 %v950_v7 }
  0x1e   :  { %198 = vperm.xlu1 %801, %v1008_v3   ;;  %138 = vperm.xlu0 %810, %v1008_v3  }
  0x22   :  { %802 = vset.pattern.permute.xlu1 %v953_v10  ;;  %146 = vperm.xlu0 %810, %v1017_v6  }
  0x23   :  { %224 = vperm.xlu1 %802, %v1001_v0  }
  0x26   :  { %813 = vset.pattern.permute.xlu0 %v951_v8 }
  0x27   :  { %803 = vset.pattern.permute.xlu1 %v954_v11  ;;  %176 = vperm.xlu0 %813, %v1017_v6  }
  0x28   :  { %254 = vperm.xlu1 %803, %v1001_v0  }
  0x2b   :  { %814 = vset.pattern.permute.xlu0 %v952_v9 }
  0x2c   :  { %258 = vperm.xlu1 %803, %v1008_v3   ;;  %194 = vperm.xlu0 %814, %v1001_v0  }
  0x30   :  { %805 = vset.pattern.permute.xlu1 %v949_v5  ;;  %206 = vperm.xlu0 %814, %v1017_v6  }
  0x31   :  { %288 = vperm.xlu1 %805, %v1008_v3  }
  0x34   :  { %816 = vset.pattern.permute.xlu0 %v953_v10 }
  0x35   :  { %806 = vset.pattern.permute.xlu1 %v947_v2  ;;  %228 = vperm.xlu0 %816, %v1008_v3  }
  0x36   :  { %56 = vperm.xlu1 %806, %v1017_v6  }
  0x39   :  { %236 = vperm.xlu0 %816, %v1017_v6  }
  0x3a   :  { %809 = vset.pattern.permute.xlu1 %v955_v12 }
  0x3b   :  { %314 = vperm.xlu1 %809, %v1001_v0  }
  0x3d   :  { %819 = vset.pattern.permute.xlu0 %v954_v11 }
  0x3e   :  { %266 = vperm.xlu0 %819, %v1017_v6  }
  0x3f   :  { %318 = vperm.xlu1 %809, %v1008_v3  }
  0x42   :  { %821 = vset.pattern.permute.xlu0 %v949_v5 }
  0x43   :  { %296 = vperm.xlu0 %821, %v1017_v6   ;;  %811 = vset.pattern.permute.xlu1 %v956_v13 }
  0x44   :  { %344 = vperm.xlu1 %811, %v1001_v0  }
  0x47   :  { %824 = vset.pattern.permute.xlu0 %v957_v14 }
  0x48   :  { %348 = vperm.xlu1 %811, %v1008_v3   ;;  %386 = vperm.xlu0 %824, %v1017_v6  }
  0x4c   :  { %812 = vset.pattern.permute.xlu1 %v957_v14  ;;  %827 = vset.pattern.permute.xlu0 %v958_v15 }
  0x4d   :  { %374 = vperm.xlu1 %812, %v1001_v0   ;;  %476 = vperm.xlu0 %827, %v1017_v6  }
  0x51   :  { %378 = vperm.xlu1 %812, %v1008_v3   ;;  %829 = vset.pattern.permute.xlu0 %v959_v16 }
  0x55   :  { %815 = vset.pattern.permute.xlu1 %v960_v17 }
  0x56   :  { %404 = vperm.xlu1 %815, %v1001_v0  }
  0x5a   :  { %408 = vperm.xlu1 %815, %v1008_v3  }
  0x5e   :  { %817 = vset.pattern.permute.xlu1 %v961_v18 }
  0x5f   :  { %434 = vperm.xlu1 %817, %v1001_v0  }
  0x63   :  { %438 = vperm.xlu1 %817, %v1008_v3  }
  0x67   :  { %818 = vset.pattern.permute.xlu1 %v958_v15 }
  0x68   :  { %464 = vperm.xlu1 %818, %v1001_v0  }
  0x6c   :  { %468 = vperm.xlu1 %818, %v1008_v3  }
  0x70   :  { %820 = vset.pattern.permute.xlu1 %v959_v16 }
  0x71   :  { %494 = vperm.xlu1 %820, %v1001_v0  }
  0x75   :  { %498 = vperm.xlu1 %820, %v1008_v3  }
  0x79   :  { %822 = vset.pattern.permute.xlu1 %v955_v12 }
  0x7a   :  { %326 = vperm.xlu1 %822, %v1017_v6  }
  0x7d   :  { %v75_v19 = vpop.permute.xlu1 %74  ;;  %v39_v21 = vpop.permute.xlu0 %38 }
  0x7e   :  { %823 = vset.pattern.permute.xlu1 %v956_v13  ;;  %v81_v33 = vsub.f32 %v728_v28, %v75_v19  ;;  %v46_v35 = vsub.f32 %v725_v30, %v39_v21  ;;  %v736_v28 = vld [vmem:[%s1237_s1 + $0x5] ss:$0 sm:$0xff] }
  0x7f   :  { %356 = vperm.xlu1 %823, %v1017_v6  }
  0x80   :  { %830 = vtanh.f32 %v81_v33  ;;  %v739_v33 = vld [vmem:[%s1237_s1 + $0x16] ss:$0 sm:$0xff] }
  0x81   :  { %v79_v20 = vpop.permute.xlu1 %78  ;;  %v44_v23 = vpop.permute.xlu0 %43  ;;  %832 = vtanh.f32 %v46_v35  ;;  %v737_v35 = vld [vmem:[%s1237_s1 + $0x15] ss:$0 sm:$0xff] }
  0x82   :  { %v82_v37 = vsub.f32 %v729_v31, %v79_v20  ;;  %v47_v38 = vsub.f32 %v726_v34, %v44_v23  ;;  %v733_v20 = vld [vmem:[%s1237_s1 + $0x13] ss:$0 sm:$0xff] }
  0x83   :  { %825 = vset.pattern.permute.xlu1 %v960_v17 }
  0x84   :  { %416 = vperm.xlu1 %825, %v1017_v6   ;;  %834 = vtanh.f32 %v82_v37  ;;  %v738_v37 = vld [vmem:[%s1237_s1 + $0x6] ss:$0 sm:$0xff] }
  0x85   :  { %836 = vtanh.f32 %v47_v38 }
  0x86   :  { %v109_v22 = vpop.permute.xlu1 %108  ;;  %v1061_v26 = vpop.permute.xlu0 %284 }
  0x87   :  { %v112_v43 = vsub.f32 %v731_v39, %v109_v22  ;;  %v742_v39 = vld [vmem:[%s1237_s1 + $0x8] ss:$0 sm:$0xff] }
  0x88   :  { %826 = vset.pattern.permute.xlu1 %v961_v18 }
  0x89   :  { %446 = vperm.xlu1 %826, %v1017_v6  }
  0x8b   :  { %v135_v24 = vpop.permute.xlu1 %134  ;;  %v87_v29 = vpop.permute.xlu0 %86 }
  0x8c   :  { %v141_v48 = vsub.f32 %v732_v44, %v135_v24  ;;  %v735_v24 = vld [vmem:[%s1237_s1 + $0x14] ss:$0 sm:$0xff] }
  0x8d   :  { %828 = vset.pattern.permute.xlu1 %v959_v16  ;;  %v831_v52 = vpop.eup %830 }
  0x8e   :  { %506 = vperm.xlu1 %828, %v1017_v6   ;;  %v833_v53 = vpop.eup %832  ;;  %v89_v60 = vmul.f32 %v831_v52, %v87_v29 }
  0x90   :  { %v165_v25 = vpop.permute.xlu1 %164  ;;  %v105_v40 = vpop.permute.xlu0 %104 }
  0x91   :  { %v111_v41 = vsub.f32 %v730_v36, %v105_v40  ;;  %v171_v49 = vsub.f32 %v734_v45, %v165_v25  ;;  %v835_v55 = vpop.eup %834  ;;  %v291_v45 = vsub.f32 %v742_v39, %v1061_v26 }
  0x92   :  { %v837_v56 = vpop.eup %836  ;;  %v90_v62 = vmul.f32 %v835_v55, %v87_v29 }
  0x93   :  { %838 = vtanh.f32 %v111_v41  ;;  %v740_v41 = vld [vmem:[%s1237_s1 + $0x7] ss:$0 sm:$0xff] }
  0x94   :  { %v1063_v27 = vpop.permute.xlu1 %168  ;;  %v117_v46 = vpop.permute.xlu0 %116  ;;  %840 = vtanh.f32 %v112_v43  ;;  %v741_v43 = vld [vmem:[%s1237_s1 + $0x17] ss:$0 sm:$0xff] }
  0x95   :  { %842 = vtanh.f32 %v141_v48  ;;  %v172_v29 = vsub.f32 %v735_v24, %v1063_v27 }
  0x96   :  { %844 = vtanh.f32 %v171_v49  ;;  %v744_v49 = vld [vmem:[%s1237_s1 + $0x9] ss:$0 sm:$0xff] }
  0x99   :  { %v1074_v32 = vpop.permute.xlu1 %198  ;;  %v139_v51 = vpop.permute.xlu0 %138 }
  0x9a   :  { %v142_v22 = vsub.f32 %v733_v20, %v139_v51  ;;  %v202_v38 = vsub.f32 %v737_v35, %v1074_v32  ;;  %v745_v51 = vld [vmem:[%s1237_s1 + $0x19] ss:$0 sm:$0xff] }
  0x9c   :  { %846 = vtanh.f32 %v142_v22 }
  0x9d   :  { %v147_v58 = vpop.permute.xlu0 %146  ;;  %848 = vtanh.f32 %v172_v29 }
  0x9e   :  { %v1085_v42 = vpop.permute.xlu1 %224 }
  0x9f   :  { %v231_v40 = vsub.f32 %v738_v37, %v1085_v42  ;;  %v743_v42 = vld [vmem:[%s1237_s1 + $0x18] ss:$0 sm:$0xff] }
  0xa0   :  { %v839_v57 = vpop.eup %838 }
  0xa1   :  { %v841_v59 = vpop.eup %840  ;;  %v119_v63 = vmul.f32 %v839_v57, %v117_v46 }
  0xa2   :  { %v120_v2 = vmul.f32 %v841_v59, %v117_v46  ;;  %v843_v5 = vpop.eup %842  ;;  %v1099_v6 = vpop.permute.xlu0 %176 }
  0xa3   :  { %v1093_v47 = vpop.permute.xlu1 %254  ;;  %v149_v7 = vmul.f32 %v843_v5, %v147_v58  ;;  %v845_v11 = vpop.eup %844 }
  0xa4   :  { %v179_v12 = vmul.f32 %v845_v11, %v1099_v6  ;;  %v261_v46 = vsub.f32 %v740_v41, %v1093_v47 }
  0xa7   :  { %v1095_v50 = vpop.permute.xlu1 %258  ;;  %v195_v19 = vpop.permute.xlu0 %194 }
  0xa8   :  { %v201_v30 = vsub.f32 %v736_v28, %v195_v19  ;;  %v262_v48 = vsub.f32 %v741_v43, %v1095_v50  ;;  %v746_v50 = vld [vmem:[%s1237_s1 + $0xa] ss:$0 sm:$0xff]  ;;  %v753_v19 = vld [vmem:[%s1237_s1 + $0x1d] ss:$0 sm:$0xff] }
  0xa9   :  { %v847_v32 = vpop.eup %846 }
  0xaa   :  { %850 = vtanh.f32 %v201_v30  ;;  %v150_v26 = vmul.f32 %v847_v32, %v147_v58  ;;  %v849_v55 = vpop.eup %848 }
  0xab   :  { %v1115_v23 = vpop.permute.xlu0 %206 }
  0xac   :  { %v1097_v54 = vpop.permute.xlu1 %288 }
  0xad   :  { %v292_v52 = vsub.f32 %v743_v42, %v1097_v54  ;;  %v748_v54 = vld [vmem:[%s1237_s1 + $0xb] ss:$0 sm:$0xff] }
  0xb0   :  { %v229_v34 = vpop.permute.xlu0 %228 }
  0xb1   :  { %v57_v61 = vpop.permute.xlu1 %56  ;;  %v232_v36 = vsub.f32 %v739_v33, %v229_v34 }
  0xb2   :  { %v59_v0 = vmul.f32 %v833_v53, %v57_v61  ;;  %v60_v1 = vmul.f32 %v837_v56, %v57_v61 }
  0xb3   :  { %852 = vtanh.f32 %v232_v36 }
  0xb4   :  { %v91_v3 = vadd.f32 %v89_v60, %v59_v0  ;;  %v92_v4 = vadd.f32 %v90_v62, %v60_v1  ;;  %854 = vtanh.f32 %v202_v38  ;;  %v237_v59 = vpop.permute.xlu0 %236  ;;  %v747_v60 = vld [vmem:[%s1237_s1 + $0x1a] ss:$0 sm:$0xff]  ;;  %v180_v0 = vmul.f32 %v849_v55, %v1099_v6  ;;  %v751_v6 = vld [vmem:[%s1237_s1 + $0x1c] ss:$0 sm:$0xff] }
  0xb5   :  { %856 = vtanh.f32 %v231_v40 }
  0xb6   :  { %v121_v8 = vadd.f32 %v119_v63, %v91_v3  ;;  %v122_v9 = vadd.f32 %v120_v2, %v92_v4  ;;  %v315_v10 = vpop.permute.xlu1 %314  ;;  %858 = vtanh.f32 %v291_v45  ;;  %v749_v63 = vld [vmem:[%s1237_s1 + $0x1b] ss:$0 sm:$0xff] }
  0xb7   :  { %860 = vtanh.f32 %v261_v46  ;;  %v321_v53 = vsub.f32 %v744_v49, %v315_v10  ;;  %v851_v57 = vpop.eup %850 }
  0xb8   :  { %v151_v13 = vadd.f32 %v149_v7, %v121_v8  ;;  %862 = vtanh.f32 %v262_v48  ;;  %v152_v58 = vadd.f32 %v150_v26, %v122_v9  ;;  %v209_v1 = vmul.f32 %v851_v57, %v1115_v23  ;;  %v750_v8 = vld [vmem:[%s1237_s1 + $0xc] ss:$0 sm:$0xff] }
  0xb9   :  { %864 = vtanh.f32 %v292_v52  ;;  %v267_v10 = vpop.permute.xlu0 %266 }
  0xba   :  { %v1102_v14 = vadd.f32 %v179_v12, %v151_v13  ;;  %v319_v15 = vpop.permute.xlu1 %318  ;;  %866 = vtanh.f32 %v321_v53  ;;  %v182_v5 = vadd.f32 %v180_v0, %v152_v58 }
  0xbb   :  { %v322_v56 = vsub.f32 %v745_v51, %v319_v15 }
  0xbc   :  { %v211_v13 = vadd.f32 %v209_v1, %v1102_v14  ;;  %v754_v14 = vld [vmem:[%s1237_s1 + $0xe] ss:$0 sm:$0xff] }
  0xbd   :  { %868 = vtanh.f32 %v322_v56 }
  0xbe   :  { %v297_v36 = vpop.permute.xlu0 %296 }
  0xbf   :  { %v1104_v16 = vpop.permute.xlu1 %344 }
  0xc0   :  { %v351_v62 = vsub.f32 %v746_v50, %v1104_v16  ;;  %v853_v3 = vpop.eup %852  ;;  %v752_v16 = vld [vmem:[%s1237_s1 + $0xd] ss:$0 sm:$0xff] }
  0xc1   :  { %v855_v9 = vpop.eup %854  ;;  %v240_v15 = vmul.f32 %v853_v3, %v237_v59 }
  0xc2   :  { %870 = vtanh.f32 %v351_v62  ;;  %v210_v12 = vmul.f32 %v855_v9, %v1115_v23 }
  0xc3   :  { %v1106_v17 = vpop.permute.xlu1 %348  ;;  %v387_v62 = vpop.permute.xlu0 %386 }
  0xc4   :  { %v352_v2 = vsub.f32 %v747_v60, %v1106_v17  ;;  %v857_v17 = vpop.eup %856  ;;  %v212_v20 = vadd.f32 %v210_v12, %v182_v5 }
  0xc5   :  { %v859_v23 = vpop.eup %858 }
  0xc6   :  { %872 = vtanh.f32 %v352_v2  ;;  %v861_v29 = vpop.eup %860  ;;  %v242_v33 = vadd.f32 %v240_v15, %v212_v20  ;;  %v299_v32 = vmul.f32 %v859_v23, %v297_v36 }
  0xc7   :  { %v863_v35 = vpop.eup %862  ;;  %v269_v37 = vmul.f32 %v861_v29, %v267_v10 }
  0xc8   :  { %v1108_v18 = vpop.permute.xlu1 %374  ;;  %v270_v38 = vmul.f32 %v863_v35, %v267_v10  ;;  %v865_v40 = vpop.eup %864 }
  0xc9   :  { %v381_v4 = vsub.f32 %v748_v54, %v1108_v18  ;;  %v867_v41 = vpop.eup %866  ;;  %v300_v49 = vmul.f32 %v865_v40, %v297_v36  ;;  %v477_v15 = vpop.permute.xlu0 %476 }
  0xca   :  { %v272_v45 = vadd.f32 %v270_v38, %v242_v33  ;;  %v869_v42 = vpop.eup %868 }
  0xcb   :  { %874 = vtanh.f32 %v381_v4 }
  0xcc   :  { %v1113_v21 = vpop.permute.xlu1 %378  ;;  %v302_v55 = vadd.f32 %v300_v49, %v272_v45  ;;  %v23_v49 = vld [vmem:[%s1238_s2 + $0x8] sm:$0xff] }
  0xcd   :  { %v382_v7 = vsub.f32 %v749_v63, %v1113_v21  ;;  %v239_v21 = vmul.f32 %v857_v17, %v237_v59 }
  0xcf   :  { %876 = vtanh.f32 %v382_v7  ;;  %v241_v30 = vadd.f32 %v239_v21, %v211_v13 }
  0xd1   :  { %v1120_v25 = vpop.permute.xlu1 %404  ;;  %v271_v43 = vadd.f32 %v269_v37, %v241_v30 }
  0xd2   :  { %v411_v18 = vsub.f32 %v750_v8, %v1120_v25  ;;  %v755_v25 = vld [vmem:[%s1237_s1 + $0x1e] ss:$0 sm:$0xff] }
  0xd3   :  { %v301_v53 = vadd.f32 %v299_v32, %v271_v43 }
  0xd4   :  { %878 = vtanh.f32 %v411_v18 }
  0xd5   :  { %v1126_v31 = vpop.permute.xlu1 %408 }
  0xd6   :  { %v412_v22 = vsub.f32 %v751_v6, %v1126_v31 }
  0xd8   :  { %880 = vtanh.f32 %v412_v22 }
  0xda   :  { %v1137_v27 = vpop.permute.xlu1 %434 }
  0xdb   :  { %v441_v24 = vsub.f32 %v752_v16, %v1137_v27  ;;  %v756_v27 = vld [vmem:[%s1237_s1 + $0xf] ss:$0 sm:$0xff] }
  0xdd   :  { %882 = vtanh.f32 %v441_v24 }
  0xde   :  { %v1150_v44 = vpop.permute.xlu1 %438 }
  0xdf   :  { %v442_v34 = vsub.f32 %v753_v19, %v1150_v44  ;;  %v757_v44 = vld [vmem:[%s1237_s1 + $0x1f] ss:$0 sm:$0xff] }
  0xe1   :  { %884 = vtanh.f32 %v442_v34 }
  0xe3   :  { %v1165_v47 = vpop.permute.xlu1 %464 }
  0xe4   :  { %v471_v31 = vsub.f32 %v754_v14, %v1165_v47  ;;  %v871_v47 = vpop.eup %870 }
  0xe5   :  { %v873_v56 = vpop.eup %872 }
  0xe6   :  { %886 = vtanh.f32 %v471_v31  ;;  %v875_v57 = vpop.eup %874 }
  0xe7   :  { %v469_v61 = vpop.permute.xlu1 %468  ;;  %v389_v2 = vmul.f32 %v875_v57, %v387_v62 }
  0xe8   :  { %v472_v39 = vsub.f32 %v755_v25, %v469_v61  ;;  %v877_v61 = vpop.eup %876 }
  0xe9   :  { %v879_v1 = vpop.eup %878  ;;  %v390_v3 = vmul.f32 %v877_v61, %v387_v62 }
  0xea   :  { %888 = vtanh.f32 %v472_v39  ;;  %v881_v5 = vpop.eup %880 }
  0xeb   :  { %v883_v7 = vpop.eup %882 }
  0xec   :  { %v495_v11 = vpop.permute.xlu1 %494 }
  0xed   :  { %v501_v48 = vsub.f32 %v756_v27, %v495_v11 }
  0xee   :  { %v885_v11 = vpop.eup %884 }
  0xef   :  { %890 = vtanh.f32 %v501_v48  ;;  %v22_v48 = vld [vmem:[%s1238_s2] sm:$0xff]  ;;  %s964_s2 = smov [#allocation4]  }
  0xf0   :  { %v499_v28 = vpop.permute.xlu1 %498  ;;  %s710_s10 = sshll.u32 %s964_s2, 4  ;;  %s711_s10 = int_to_ptr.vmem [resolvable:$true] %s710_s10 }
  0xf1   :  { %v502_v52 = vsub.f32 %v757_v44, %v499_v28  ;;  %s902_s11 = scalar_lea.vmem %s711_s10, 256  ;;  %p907_p1 = scmp.lt.s32.totalorder %s711_s10, %s711_s10 }
  0xf2   :  { %p903_p0 = scmp.ne.s32.totalorder %s711_s10, %s902_s11  ;;  %p908_p2 = scmp.lt.s32.totalorder %s902_s11, %s902_s11 }
  0xf3   :  { %892 = vtanh.f32 %v502_v52  ;;  %v887_v12 = vpop.eup %886 }
  0xf4   :  { %v479_v22 = vmul.f32 %v887_v12, %v477_v15  ;;  %p909_p3 = por %p908_p2, %p907_p1 }
  0xf5   :  { %v327_v46 = vpop.permute.xlu1 %326 }
  0xf6   :  { %v329_v51 = vmul.f32 %v867_v41, %v327_v46  ;;  %v330_v26 = vmul.f32 %v869_v42, %v327_v46  ;;  %v962_v42 = vmov 0.0   ;;  %p910_p4 = pnand %p909_p3, %p903_p0 }
  0xf7   :  { %v889_v13 = vpop.eup %888  ;;  %764 = vmatprep.subr.mxu0 %v962_v42  ;;  %769 = vmatprep.subr.mxu1 %v962_v42 }
  0xf8   :  { %v331_v59 = vadd.f32 %v329_v51, %v301_v53  ;;  %v332_v60 = vadd.f32 %v330_v26, %v302_v55  ;;  %v480_v14 = vmul.f32 %v889_v13, %v477_v15  ;;  %765 = vmatpush3.msra.mxu0 %v22_v48  ;;  %766 = vmatprep.mubr.msk.f32.mxu0 %vm963_vm1, %v962_v42 }
  0xf9   :  { %770 = vmatpush3.msra.mxu1 %v23_v49  ;;  %771 = vmatprep.mubr.msk.f32.mxu1 %vm963_vm1, %v962_v42 }
  0xfa   :  { %v357_v50 = vpop.permute.xlu1 %356 }
  0xfb   :  { %v359_v58 = vmul.f32 %v871_v47, %v357_v50  ;;  %v360_v54 = vmul.f32 %v873_v56, %v357_v50 }
  0xfc   :  { %v891_v21 = vpop.eup %890 }
  0xfd   :  { %v361_v63 = vadd.f32 %v359_v58, %v331_v59  ;;  %v362_v0 = vadd.f32 %v360_v54, %v332_v60 }
  0xff   :  { %v417_v4 = vpop.permute.xlu1 %416  ;;  %v391_v8 = vadd.f32 %v389_v2, %v361_v63  ;;  %v392_v9 = vadd.f32 %v390_v3, %v362_v0 }
 0x100   :  { %v419_v10 = vmul.f32 %v879_v1, %v417_v4  ;;  %v420_v6 = vmul.f32 %v881_v5, %v417_v4  ;;  %v893_v25 = vpop.eup %892 }
 0x102   :  { %v421_v17 = vadd.f32 %v419_v10, %v391_v8  ;;  %v422_v18 = vadd.f32 %v420_v6, %v392_v9 }
 0x104   :  { %v447_v16 = vpop.permute.xlu1 %446 }
 0x105   :  { %v449_v19 = vmul.f32 %v883_v7, %v447_v16  ;;  %v450_v20 = vmul.f32 %v885_v11, %v447_v16 }
 0x107   :  { %v451_v23 = vadd.f32 %v449_v19, %v421_v17  ;;  %v452_v24 = vadd.f32 %v450_v20, %v422_v18 }
 0x109   :  { %v507_v28 = vpop.permute.xlu1 %506  ;;  %v482_v29 = vadd.f32 %v480_v14, %v452_v24  ;;  %v481_v30 = vadd.f32 %v479_v22, %v451_v23 }
 0x10a   :  { %v509_v33 = vmul.f32 %v891_v21, %v507_v28  ;;  %v510_v34 = vmul.f32 %v893_v25, %v507_v28 }
 0x10c   :  { %v512_v35 = vadd.f32 %v510_v34, %v482_v29  ;;  %v511_v36 = vadd.f32 %v509_v33, %v481_v30 }
 0x10e   :  { %v517_v31 = vsel %vm513_vm0, %v512_v35, -inf  ;;  %v514_v37 = vsel %vm513_vm0, %v511_v36, -inf }
 0x10f   :  { %518 = vmax.xlane.f32.xlu0 %v517_v31  ;;  %515 = vmax.xlane.f32.xlu1 %v514_v37 }
 0x198   :  { %v519_v38 = vpop.xlane.xlu0 %518  ;;  %v516_v39 = vpop.xlane.xlu1 %515 }
 0x199   :  { %v521_v27 = vsub.f32 %v512_v35, %v519_v38  ;;  %v520_v40 = vsub.f32 %v511_v36, %v516_v39 }
 0x19b   :  { %v524_v41 = vmul.f32 1.442695, %v521_v27  ;;  %v522_v43 = vmul.f32 1.442695, %v520_v40 }
 0x19d   :  { %894 = vpow2.f32 %v524_v41 }
 0x19e   :  { %896 = vpow2.f32 %v522_v43 }
 0x1aa   :  { %v895_v45 = vpop.eup %894 }
 0x1ab   :  { %v897_v32 = vpop.eup %896  ;;  %v529_v44 = vsel %vm513_vm0, %v895_v45, 0.0 }
 0x1ac   :  { %530 = vadd.xlane.f32.xlu1 %v529_v44  ;;  %v526_v46 = vsel %vm513_vm0, %v897_v32, 0.0 }
 0x1ad   :  { %527 = vadd.xlane.f32.xlu0 %v526_v46 }
 0x235   :  { %v531_v51 = vpop.xlane.xlu1 %530 }
 0x236   :  { %v528_v26 = vpop.xlane.xlu0 %527  ;;  %898 = vrcp.f32 %v531_v51 }
 0x237   :  { %900 = vrcp.f32 %v528_v26 }
 0x243   :  { %v899_v52 = vpop.eup %898 }
 0x244   :  { %v901_v47 = vpop.eup %900  ;;  %v535_v53 = vmul.f32 %v899_v52, %v531_v51 }
 0x245   :  { %v534_v55 = vmul.f32 %v901_v47, %v528_v26 }
 0x246   :  { %v537_v56 = vsub.f32 2.0, %v535_v53 }
 0x247   :  { %v536_v50 = vsub.f32 2.0, %v534_v55 }
 0x248   :  { %v539_v57 = vmul.f32 %v899_v52, %v537_v56 }
 0x249   :  { %v538_v59 = vmul.f32 %v901_v47, %v536_v50 }
 0x24a   :  { %v541_v60 = vmul.f32 %v895_v45, %v539_v57 }
 0x24b   :  { %v540_v58 = vmul.f32 %v897_v32, %v538_v59 }
 0x24c   :  { %543 = vst.msk [vmem:[#allocation4 + $0x8] sm:$0xff] %vm513_vm0, %v541_v60  ;;  %772 = vmatmul.mubr.msk.f32.vlgmr.msra.gmra.mxu1 %vm513_vm0, %v541_v60 }
 0x24d   :  { %542 = vst.msk [vmem:[#allocation4] sm:$0xff] %vm513_vm0, %v540_v58  ;;  %767 = vmatmul.mubr.msk.f32.vlgmr.msra.gmra.mxu0 %vm513_vm0, %v540_v58 }
 0x24e   :  { %913 = shalt.err (!%p910_p4)
}
 0x24f   :  { %s965_s12 = smov 128   ;;  %s966_s13 = smov 8   ;;  %vm690_vm2 = vcmask 261120  }
 0x250   :  { %716 = dma.vmem_to_hbm [thread:$0]  %s711_s10, 256, %s1241_s5, [#allocation5], %s965_s12, %s965_s12, %s966_s13  }
 0x251   :  { %s967_s16 = smov [#allocation2]  }
 0x252   :  { %s698_s17 = sshll.u32 %s967_s16, 4  ;;  %s699_s17 = int_to_ptr.vmem [resolvable:$true] %s698_s17 }
 0x253   :  { %s922_s18 = scalar_lea.vmem %s699_s17, 256  ;;  %p927_p6 = scmp.lt.s32.totalorder %s699_s17, %s699_s17 }
 0x254   :  { %p923_p5 = scmp.ne.s32.totalorder %s699_s17, %s922_s18  ;;  %p928_p7 = scmp.lt.s32.totalorder %s922_s18, %s922_s18 }
 0x256   :  { %p929_p8 = por %p928_p7, %p927_p6 }
 0x258   :  { %p930_p9 = pnand %p929_p8, %p923_p5 }
 0x30c   :  { %v686_v54 = vpop.f32.mrf.mxu1 }
 0x30d   :  { %v613_v61 = vpop.f32.mrf.mxu0  ;;  %692 = vst.msk [vmem:[#allocation2 + $0x8] sm:$0xff] %vm690_vm2, %v686_v54 }
 0x30e   :  { %691 = vst.msk [vmem:[#allocation2] sm:$0xff] %vm690_vm2, %v613_v61  ;;  %v773_v62 = vpop.f32.mrf.mxu1 }
 0x30f   :  { %v768_v63 = vpop.f32.mrf.mxu0 }
 0x310   :  { %933 = shalt.err (!%p930_p9)
}
 0x311   :  { %704 = dma.vmem_to_hbm [thread:$0]  %s699_s17, 256, %s1240_s4, [#allocation3], %s965_s12, %s965_s12, %s966_s13  }
 0x312   :  { %942 = dma.done.wait [#allocation3], 256  }
 0x313   :  { %943 = vsyncadd [#allocation3], 4294967040 }
 0x314   :  { %944 = dma.done.wait [#allocation5], 256  }
 0x315   :  { %945 = vsyncadd [#allocation5], 4294967040 }
 0x316   :  { %723 = vsyncpa [#allocation3], 1 }
 0x317   :  { %724 = vsyncpa [#allocation5], 1 }

</bundles_post_ra>
